<compile_context>
chip_gen: v6e
topology: v6e:2x2x1
jax: 0.10.0
libtpu: 0.0.40
codegen_flags: <defaults>
</compile_context>

<pallas_src>
import functools

import jax
import jax.numpy as jnp
from jax.experimental import pallas as pl
from jax.experimental.pallas import tpu as pltpu

FEAT_DIM = 512   # ResNet-18/34 trunk width assumed by nn.Linear(512, num_classes)
LANE = 128
NEG_BIG = -1e30  # effectively -inf for padded logit lanes


def _round_up(x, m):
    return (x + m - 1) // m * m


def _choose_batch_tile(batch):
    if batch <= 128:
        return batch
    for cand in (256, 128, 64, 32, 16, 8):
        if batch % cand == 0:
            return cand
    return batch


def _choose_spatial_tile(hw):
    if hw % LANE != 0:
        return hw  # full spatial axis in one block (block == full dim is legal)
    best = LANE
    t = LANE
    while t <= min(hw, 2048):
        if hw % t == 0:
            best = t
        t += LANE
    return best


# ----------------------------------------------------------------------------
# Fused kernel: spatial-sum accumulation + (proj -> fc -> log_softmax) epilogue
# ----------------------------------------------------------------------------
def _fused_kernel(x_ref, wp_ref, bp_ref, wf_ref, bf_ref, o_ref, acc_ref,
                  *, inv_hw):
    # x_ref : (bm, C, ts)  bf16/f32 image tile
    # wp_ref: (C, 512)     backbone projection weight   (VMEM-resident)
    # bp_ref: (1, 512)     backbone projection bias
    # wf_ref: (512, Np)    fc weight, zero-padded to lane-dense Np
    # bf_ref: (1, Np)      fc bias, padded lanes = NEG_BIG
    # o_ref : (bm, Np)     log-softmax output (lane-dense)
    # acc_ref: (bm, C)     f32 spatial-sum accumulator (scratch)
    s = pl.program_id(1)

    @pl.when(s == 0)
    def _():
        acc_ref[...] = jnp.zeros_like(acc_ref)

    # Partial spatial sum of this tile, accumulated in f32.
    acc_ref[...] += jnp.sum(x_ref[...].astype(jnp.float32), axis=-1)

    @pl.when(s == pl.num_programs(1) - 1)
    def _():
        pooled = acc_ref[...] * inv_hw                                  # (bm, C)
        feats = jnp.dot(pooled, wp_ref[...],
                        preferred_element_type=jnp.float32) + bp_ref[...]
        logits = jnp.dot(feats, wf_ref[...],
                         preferred_element_type=jnp.float32) + bf_ref[...]
        # Padded lanes carry bias = NEG_BIG -> contribute nothing to max / sum.
        m = jnp.max(logits, axis=-1, keepdims=True)
        shifted = logits - m
        lse = jnp.log(jnp.sum(jnp.exp(shifted), axis=-1, keepdims=True))
        o_ref[...] = (shifted - lse).astype(o_ref.dtype)


# ----------------------------------------------------------------------------
# Full forward (ClassificationResNet.forward)
# ----------------------------------------------------------------------------
def classification_resnet_forward(input_batch, params):
    """input_batch: (B, C, H, W), NCHW like PyTorch (bf16 recommended)."""
    B, C, H, W = input_batch.shape
    HW = H * W
    # Keep the input dtype (no f32 upcast in the wrapper): the image is the
    # dominant HBM traffic; the kernel accumulates in f32.
    x = input_batch.reshape(B, C, HW)

    # TODO(synk): the real resnet_module is an external, user-supplied backbone;
    # a deterministic pool+projection stand-in producing 512 features is used.
    w_proj = params["w_proj"].astype(jnp.float32)                 # (C, 512)
    b_proj = params["b_proj"].reshape(1, FEAT_DIM).astype(jnp.float32)
    w_fc = params["w_fc"].astype(jnp.float32)                     # (512, N)
    b_fc = params["b_fc"].astype(jnp.float32)                     # (N,)
    num_classes = w_fc.shape[1]

    # Lane-dense classifier: pad N up to a multiple of 128.  Zero weight
    # columns + NEG_BIG bias on the padded lanes keeps the normalizer exact.
    n_pad = max(LANE, _round_up(num_classes, LANE))
    w_fc_p = jnp.zeros((FEAT_DIM, n_pad), jnp.float32).at[:, :num_classes].set(w_fc)
    b_fc_p = jnp.full((1, n_pad), NEG_BIG, jnp.float32).at[0, :num_classes].set(b_fc)

    bm = _choose_batch_tile(B)
    ts = _choose_spatial_tile(HW)
    grid = (B // bm, HW // ts)

    # Explicit VMEM budget: sized from the actual tiles (double-buffered),
    # clamped to stay within v7x's 64 MiB physical VMEM.
    x_bytes = jnp.dtype(x.dtype).itemsize
    tile_vmem = (
        2 * bm * C * ts * x_bytes                     # double-buffered image tile
        + 2 * (C * FEAT_DIM + FEAT_DIM) * 4           # proj weight + bias
        + 2 * (FEAT_DIM * n_pad + n_pad) * 4          # fc weight + bias (padded)
        + 2 * bm * n_pad * 4                          # output tile
        + bm * max(C, LANE) * 4                       # accumulator scratch (padded)
    )
    vmem_limit = int(min(max(4 * tile_vmem, 32 * 1024 * 1024), 48 * 1024 * 1024))

    kernel = functools.partial(_fused_kernel, inv_hw=1.0 / float(HW))

    out_padded = pl.pallas_call(
        kernel,
        out_shape=jax.ShapeDtypeStruct((B, n_pad), jnp.float32),
        grid_spec=pltpu.PrefetchScalarGridSpec(
            num_scalar_prefetch=0,
            grid=grid,
            in_specs=[
                pl.BlockSpec((bm, C, ts), lambda b, s: (b, 0, s)),      # image tile
                pl.BlockSpec((C, FEAT_DIM), lambda b, s: (0, 0)),       # w_proj
                pl.BlockSpec((1, FEAT_DIM), lambda b, s: (0, 0)),       # b_proj
                pl.BlockSpec((FEAT_DIM, n_pad), lambda b, s: (0, 0)),   # w_fc (padded)
                pl.BlockSpec((1, n_pad), lambda b, s: (0, 0)),          # b_fc (padded)
            ],
            out_specs=pl.BlockSpec((bm, n_pad), lambda b, s: (b, 0)),
            scratch_shapes=[pltpu.VMEM((bm, C), jnp.float32)],
        ),
        compiler_params=pltpu.CompilerParams(
            dimension_semantics=("parallel", "arbitrary"),
            vmem_limit_bytes=vmem_limit,
        ),
    )(x, w_proj, b_proj, w_fc_p, b_fc_p)

    # Slice back to the real class count (done once, outside the kernel).
    return out_padded[:, :num_classes]


def init_params(key, in_channels, num_classes):
    k1, k2, k3, k4 = jax.random.split(key, 4)
    # Stand-in backbone projection params
    w_proj = jax.random.normal(k1, (in_channels, FEAT_DIM), jnp.float32) * 0.05
    b_proj = jax.random.normal(k2, (FEAT_DIM,), jnp.float32) * 0.01
    # fc params, init like nn.Linear: U(-1/sqrt(512), 1/sqrt(512))
    bound = 1.0 / jnp.sqrt(jnp.float32(FEAT_DIM))
    w_fc = jax.random.uniform(k3, (FEAT_DIM, num_classes), jnp.float32, -bound, bound)
    b_fc = jax.random.uniform(k4, (num_classes,), jnp.float32, -bound, bound)
    return {"w_proj": w_proj, "b_proj": b_proj, "w_fc": w_fc, "b_fc": b_fc}


if __name__ == "__main__":
    key = jax.random.PRNGKey(0)
    kx, kp = jax.random.split(key)

    B, C, H, W = 2, 4, 16, 16
    num_classes = 10

    # Keep the image in bf16 in HBM; the kernel accumulates in f32.
    x = jax.random.normal(kx, (B, C, H, W), jnp.float32).astype(jnp.bfloat16)
    params = init_params(kp, C, num_classes)

    out = classification_resnet_forward(x, params)
    out = jax.block_until_ready(out)

    assert out.shape == (B, num_classes)

    # log_softmax rows should exponentiate-and-sum to 1.
    row_sums = jnp.exp(out).sum(axis=-1)
    assert bool(jnp.all(jnp.abs(row_sums - 1.0) < 1e-3)), row_sums

    # Pure-JAX reference on the same bf16 input (f32 math).
    xf = x.astype(jnp.float32)
    pooled = xf.reshape(B, C, H * W).mean(axis=-1)
    feats = pooled @ params["w_proj"] + params["b_proj"]
    logits = feats @ params["w_fc"] + params["b_fc"]
    ref = jax.nn.log_softmax(logits, axis=-1)
    assert bool(jnp.allclose(out, ref, atol=2e-3, rtol=2e-3)), float(
        jnp.max(jnp.abs(out - ref)))

    print("KERNEL_OK")
</pallas_src>

<mosaic_0001>
module attributes {stable_mosaic.version = 11 : i64} {
  func.func @_fused_kernel(%arg0: i32, %arg1: i32, %arg2: memref<2x4x256xbf16, #tpu.memory_space<vmem>>, %arg3: memref<4x512xf32, #tpu.memory_space<vmem>>, %arg4: memref<1x512xf32, #tpu.memory_space<vmem>>, %arg5: memref<512x128xf32, #tpu.memory_space<vmem>>, %arg6: memref<1x128xf32, #tpu.memory_space<vmem>>, %arg7: memref<2x128xf32, #tpu.memory_space<vmem>>, %arg8: memref<2x4xf32, #tpu.memory_space<vmem>>) attributes {dimension_semantics = [#tpu.dimension_semantics<parallel>, #tpu.dimension_semantics<arbitrary>], iteration_bounds = array<i64: 1, 1>, scalar_prefetch = 0 : i64, scratch_operands = 1 : i64, tpu.core_type = #tpu.core_type<tc>, window_params = [{transform_indices = @transform_0, window_bounds = array<i64: 2, 4, 256>}, {pipeline_mode = #tpu.pipeline_mode<synchronous>, transform_indices = @transform_1, window_bounds = array<i64: 4, 512>}, {pipeline_mode = #tpu.pipeline_mode<synchronous>, transform_indices = @transform_2, window_bounds = array<i64: 1, 512>}, {pipeline_mode = #tpu.pipeline_mode<synchronous>, transform_indices = @transform_3, window_bounds = array<i64: 512, 128>}, {pipeline_mode = #tpu.pipeline_mode<synchronous>, transform_indices = @transform_4, window_bounds = array<i64: 1, 128>}, {transform_indices = @transform_5, window_bounds = array<i64: 2, 128>}]} {
    %c0_i32 = arith.constant 0 : i32
    %0 = arith.cmpi eq, %arg1, %c0_i32 : i32
    %1 = arith.extui %0 : i1 to i32
    %c0_i32_0 = arith.constant 0 : i32
    %2 = arith.cmpi ne, %1, %c0_i32_0 : i32
    scf.if %2 {
      %cst_9 = arith.constant 0.000000e+00 : f32
      %12 = vector.broadcast %cst_9 : f32 to vector<2x4xf32>
      %c0_10 = arith.constant 0 : index
      %c0_11 = arith.constant 0 : index
      %13 = vector.load %arg8[%c0_10, %c0_11] : memref<2x4xf32, #tpu.memory_space<vmem>>, vector<2x4xf32>
      tpu.vector_store %arg8[%c0_10, %c0_11], %12 {strides = array<i32>} : memref<2x4xf32, #tpu.memory_space<vmem>>, vector<2x4xf32>,
    } else {
    }
    %c0 = arith.constant 0 : index
    %c0_1 = arith.constant 0 : index
    %3 = vector.load %arg8[%c0, %c0_1] : memref<2x4xf32, #tpu.memory_space<vmem>>, vector<2x4xf32>
    %c0_2 = arith.constant 0 : index
    %c0_3 = arith.constant 0 : index
    %c0_4 = arith.constant 0 : index
    %4 = vector.load %arg2[%c0_2, %c0_3, %c0_4] : memref<2x4x256xbf16, #tpu.memory_space<vmem>>, vector<2x4x256xbf16>
    %5 = arith.extf %4 : vector<2x4x256xbf16> to vector<2x4x256xf32>
    %cst = arith.constant dense<0.000000e+00> : vector<2x4xf32>
    %6 = vector.multi_reduction <add>, %5, %cst [2] : vector<2x4x256xf32> to vector<2x4xf32>
    %7 = arith.addf %3, %6 : vector<2x4xf32>
    %c0_5 = arith.constant 0 : index
    %c0_6 = arith.constant 0 : index
    %8 = vector.load %arg8[%c0_5, %c0_6] : memref<2x4xf32, #tpu.memory_space<vmem>>, vector<2x4xf32>
    tpu.vector_store %arg8[%c0_5, %c0_6], %7 {strides = array<i32>} : memref<2x4xf32, #tpu.memory_space<vmem>>, vector<2x4xf32>,
    %c0_i32_7 = arith.constant 0 : i32
    %9 = arith.cmpi eq, %arg1, %c0_i32_7 : i32
    %10 = arith.extui %9 : i1 to i32
    %c0_i32_8 = arith.constant 0 : i32
    %11 = arith.cmpi ne, %10, %c0_i32_8 : i32
    scf.if %11 {
      %c0_9 = arith.constant 0 : index
      %c0_10 = arith.constant 0 : index
      %12 = vector.load %arg8[%c0_9, %c0_10] : memref<2x4xf32, #tpu.memory_space<vmem>>, vector<2x4xf32>
      %cst_11 = arith.constant 3.906250e-03 : f32
      %13 = vector.broadcast %cst_11 : f32 to vector<2x4xf32>
      %14 = arith.mulf %12, %13 : vector<2x4xf32>
      %c0_12 = arith.constant 0 : index
      %c0_13 = arith.constant 0 : index
      %15 = vector.load %arg3[%c0_12, %c0_13] : memref<4x512xf32, #tpu.memory_space<vmem>>, vector<4x512xf32>
      %cst_14 = arith.constant dense<0.000000e+00> : vector<2x512xf32>
      %16 = tpu.matmul %14, %15, %cst_14 {dimension_numbers = #tpu.dot_dimension_numbers<[1], [0], [0], [1], [0, 0, 1, 1], [], []>} : vector<2x4xf32>, vector<4x512xf32>, vector<2x512xf32> -> vector<2x512xf32>
      %c0_15 = arith.constant 0 : index
      %c0_16 = arith.constant 0 : index
      %17 = vector.load %arg4[%c0_15, %c0_16] : memref<1x512xf32, #tpu.memory_space<vmem>>, vector<1x512xf32>
      %18 = vector.broadcast %17 : vector<1x512xf32> to vector<2x512xf32>
      %19 = arith.addf %16, %18 : vector<2x512xf32>
      %c0_17 = arith.constant 0 : index
      %c0_18 = arith.constant 0 : index
      %20 = vector.load %arg5[%c0_17, %c0_18] : memref<512x128xf32, #tpu.memory_space<vmem>>, vector<512x128xf32>
      %cst_19 = arith.constant dense<0.000000e+00> : vector<2x128xf32>
      %21 = tpu.matmul %19, %20, %cst_19 {dimension_numbers = #tpu.dot_dimension_numbers<[1], [0], [0], [1], [0, 0, 1, 1], [], []>} : vector<2x512xf32>, vector<512x128xf32>, vector<2x128xf32> -> vector<2x128xf32>
      %c0_20 = arith.constant 0 : index
      %c0_21 = arith.constant 0 : index
      %22 = vector.load %arg6[%c0_20, %c0_21] : memref<1x128xf32, #tpu.memory_space<vmem>>, vector<1x128xf32>
      %23 = vector.broadcast %22 : vector<1x128xf32> to vector<2x128xf32>
      %24 = arith.addf %21, %23 : vector<2x128xf32>
      %cst_22 = arith.constant dense<0xFF800000> : vector<2xf32>
      %25 = vector.multi_reduction <maximumf>, %24, %cst_22 [1] : vector<2x128xf32> to vector<2xf32>
      %26 = vector.shape_cast %25 : vector<2xf32> to vector<2x1xf32>
      %27 = vector.broadcast %26 : vector<2x1xf32> to vector<2x128xf32>
      %28 = arith.subf %24, %27 : vector<2x128xf32>
      %29 = math.exp %28 : vector<2x128xf32>
      %cst_23 = arith.constant dense<0.000000e+00> : vector<2xf32>
      %30 = vector.multi_reduction <add>, %29, %cst_23 [1] : vector<2x128xf32> to vector<2xf32>
      %31 = vector.shape_cast %30 : vector<2xf32> to vector<2x1xf32>
      %32 = math.log %31 : vector<2x1xf32>
      %33 = vector.broadcast %32 : vector<2x1xf32> to vector<2x128xf32>
      %34 = arith.subf %28, %33 : vector<2x128xf32>
      %c0_24 = arith.constant 0 : index
      %c0_25 = arith.constant 0 : index
      %35 = vector.load %arg7[%c0_24, %c0_25] : memref<2x128xf32, #tpu.memory_space<vmem>>, vector<2x128xf32>
      tpu.vector_store %arg7[%c0_24, %c0_25], %34 {strides = array<i32>} : memref<2x128xf32, #tpu.memory_space<vmem>>, vector<2x128xf32>,
    } else {
    }
    return
  }
  func.func @transform_0(%arg0: i32, %arg1: i32) -> (i32, i32, i32) {
    %c0_i32 = arith.constant 0 : i32
    %c0_i32_0 = arith.constant 0 : i32
    return %arg0, %c0_i32, %arg1 : i32, i32, i32
  }
  func.func @transform_1(%arg0: i32, %arg1: i32) -> (i32, i32) {
    %c0_i32 = arith.constant 0 : i32
    %c0_i32_0 = arith.constant 0 : i32
    %c0_i32_1 = arith.constant 0 : i32
    return %c0_i32, %c0_i32_0 : i32, i32
  }
  func.func @transform_2(%arg0: i32, %arg1: i32) -> (i32, i32) {
    %c0_i32 = arith.constant 0 : i32
    %c0_i32_0 = arith.constant 0 : i32
    %c0_i32_1 = arith.constant 0 : i32
    return %c0_i32, %c0_i32_0 : i32, i32
  }
  func.func @transform_3(%arg0: i32, %arg1: i32) -> (i32, i32) {
    %c0_i32 = arith.constant 0 : i32
    %c0_i32_0 = arith.constant 0 : i32
    %c0_i32_1 = arith.constant 0 : i32
    return %c0_i32, %c0_i32_0 : i32, i32
  }
  func.func @transform_4(%arg0: i32, %arg1: i32) -> (i32, i32) {
    %c0_i32 = arith.constant 0 : i32
    %c0_i32_0 = arith.constant 0 : i32
    %c0_i32_1 = arith.constant 0 : i32
    return %c0_i32, %c0_i32_0 : i32, i32
  }
  func.func @transform_5(%arg0: i32, %arg1: i32) -> (i32, i32) {
    %c0_i32 = arith.constant 0 : i32
    %c0_i32_0 = arith.constant 0 : i32
    return %arg0, %c0_i32 : i32, i32
  }
}

</mosaic_0001>

<bundles_post_ra>
// kernel: tpu_custom_call.1
= control target key start
LH: loop header
LB: loop body
LE: loop exit
PB: predicated region body
PF: predicated region fallthrough
CT: control target
= control target key end

     0   :  { %10 = vsyncpa [#allocation4], 0  ;;  %s827_s0 = inlined_call_operand.hbm [shape: bf16[2,4,256], index: 0, kind: input, shape index: {}]   ;;  %s828_s1 = inlined_call_operand.hbm [shape: f32[4,512], index: 1, kind: input, shape index: {}]   ;;  %s829_s2 = inlined_call_operand.hbm [shape: f32[1,512], index: 2, kind: input, shape index: {}]   ;;  %s830_s3 = inlined_call_operand.hbm [shape: f32[512,128], index: 3, kind: input, shape index: {}]   ;;  %s831_s4 = inlined_call_operand.vmem [shape: f32[1,128], index: 4, kind: input, shape index: {}]   ;;  %s832_s5 = inlined_call_operand.hbm [shape: f32[2,128], index: 5, kind: output, shape index: {}]  }
   0x1   :  { %11 = vsyncpa [#allocation7], 0 }
   0x2   :  { %12 = vsyncpa [#allocation10], 0 }
   0x3   :  { %13 = vsyncpa [#allocation5], 0  ;;  %s752_s18 = smov [#allocation6]   ;;  %s753_s20 = smov [#allocation3]  }
   0x4   :  { %s32_s19 = sshll.u32 %s752_s18, 4  ;;  %s19_s21 = sshll.u32 %s753_s20, 4  ;;  %s33_s19 = int_to_ptr.vmem [resolvable:$true] %s32_s19  ;;  %s20_s21 = int_to_ptr.vmem [resolvable:$true] %s19_s21 }
   0x5   :  { %s652_s22 = scalar_lea.vmem %s33_s19, 256  ;;  %p657_p1 = scmp.lt.s32.totalorder %s33_s19, %s33_s19 }
   0x6   :  { %p653_p0 = scmp.ne.s32.totalorder %s33_s19, %s652_s22  ;;  %p658_p2 = scmp.lt.s32.totalorder %s652_s22, %s652_s22 }
   0x8   :  { %p659_p3 = por %p658_p2, %p657_p1 }
   0xa   :  { %p660_p4 = pnand %p659_p3, %p653_p0 }
   0xc   :  { %663 = shalt.err (!%p660_p4)
}
   0xd   :  { %35 = dma.hbm_to_vmem [thread:$0]  %s828_s1, 256, %s33_s19, [#allocation7]  }
   0xe   :  { %s672_s25 = scalar_lea.vmem %s20_s21, 128  ;;  %p677_p6 = scmp.lt.s32.totalorder %s20_s21, %s20_s21 }
   0xf   :  { %p673_p5 = scmp.ne.s32.totalorder %s20_s21, %s672_s25  ;;  %p678_p7 = scmp.lt.s32.totalorder %s672_s25, %s672_s25 }
  0x11   :  { %p679_p8 = por %p678_p7, %p677_p6 }
  0x13   :  { %p680_p9 = pnand %p679_p8, %p673_p5 }
  0x15   :  { %683 = shalt.err (!%p680_p9)
}
  0x16   :  { %s754_s26 = smov 64   ;;  %s755_s27 = smov 4  }
  0x17   :  { %25 = dma.hbm_to_vmem [thread:$0]  %s827_s0, 128, %s20_s21, [#allocation4], %s754_s26, %s754_s26, %s755_s27  }
  0x18   :  { %s756_s30 = smov [#allocation8]   ;;  %s757_s7 = smov [#allocation9]  }
  0x19   :  { %s42_s6 = sshll.u32 %s756_s30, 4  ;;  %s51_s8 = sshll.u32 %s757_s7, 4  ;;  %s43_s6 = int_to_ptr.vmem [resolvable:$true] %s42_s6  ;;  %s52_s8 = int_to_ptr.vmem [resolvable:$true] %s51_s8 }
  0x1a   :  { %s692_s1 = scalar_lea.vmem %s43_s6, 64  ;;  %p697_p11 = scmp.lt.s32.totalorder %s43_s6, %s43_s6 }
  0x1b   :  { %p693_p10 = scmp.ne.s32.totalorder %s43_s6, %s692_s1  ;;  %p698_p12 = scmp.lt.s32.totalorder %s692_s1, %s692_s1 }
  0x1d   :  { %p699_p13 = por %p698_p12, %p697_p11 }
  0x1f   :  { %p700_p0 = pnand %p699_p13, %p693_p10 }
  0x21   :  { %703 = shalt.err (!%p700_p0)
}
  0x22   :  { %45 = dma.hbm_to_vmem [thread:$0]  %s829_s2, 64, %s43_s6, [#allocation7]  }
  0x23   :  { %s712_s11 = scalar_lea.vmem %s52_s8, 8192  ;;  %p717_p2 = scmp.lt.s32.totalorder %s52_s8, %s52_s8 }
  0x24   :  { %p713_p1 = scmp.ne.s32.totalorder %s52_s8, %s712_s11  ;;  %p718_p3 = scmp.lt.s32.totalorder %s712_s11, %s712_s11 }
  0x26   :  { %p719_p4 = por %p718_p3, %p717_p2 }
  0x28   :  { %p720_p5 = pnand %p719_p4, %p713_p1 }
  0x2a   :  { %723 = shalt.err (!%p720_p5)
}
  0x2b   :  { %s758_s0 = smov 128   ;;  %s759_s12 = smov 8  }
  0x2c   :  { %57 = dma.hbm_to_vmem [thread:$0]  %s830_s3, 8192, %s52_s8, [#allocation10], %s758_s0, %s758_s0, %s759_s12  }
  0x2d   :  { %744 = dma.done.wait [#allocation4], 128  }
  0x2e   :  { %745 = vsyncadd [#allocation4], 4294967168 }
  0x2f   :  { %746 = dma.done.wait [#allocation7], 320  }
  0x30   :  { %747 = vsyncadd [#allocation7], 4294966976 }
  0x31   :  { %748 = dma.done.wait [#allocation10], 8192  }
  0x32   :  { %749 = vsyncadd [#allocation10], 4294959104  ;;  %v555_v0 = vld [vmem:[#allocation3] sm:$0xff]   ;;  %vm89_vm0 = vcmask 1043456   ;;  %vm76_vm1 = vcmask 25600   ;;  %v760_v11 = vmov 0.0   ;;  %v102_v18 = vlaneseq }
  0x33   :  { %v556_v1 = vunpack.c.l.bf16 %v555_v0  ;;  %v557_v2 = vunpack.c.h.bf16 %v555_v0  ;;  %77 = vst.msk [vmem:[#allocation2] sm:$0x3] %vm76_vm1, %v760_v11  ;;  %227 = vmatprep.mubr.f32.mxu0 %v760_v11  ;;  %298 = vmatprep.mubr.f32.mxu1 %v760_v11  ;;  %v123_v12 = vld [vmem:[#allocation6] sm:$0xff]  ;;  %v124_v13 = vld [vmem:[#allocation6 + $0x8] sm:$0xff]  ;;  %vm112_vm2 = vcmask 1041409   ;;  %vm151_vm3 = vcmask 31744  }
  0x34   :  { %v149_v14 = vcombine.high %v123_v12, %v123_v12  ;;  %v150_v15 = vcombine.high %v124_v13, %v124_v13  ;;  %v336_v16 = vld [vmem:[#allocation9 + $0xf8] sm:$0xff]  ;;  %v103_v19 = vand.u32 127, %v102_v18  ;;  %v813_v20 = vshrl.u32 %v102_v18, 7  ;;  %v335_v33 = vld [vmem:[#allocation9 + $0xf0] sm:$0xff]  ;;  %v334_v37 = vld [vmem:[#allocation9 + $0xe8] sm:$0xff] }
  0x35   :  { %v85_v3 = vcombine.high %v556_v1, %v556_v1  ;;  %v90_v4 = vsel %vm89_vm0, %v556_v1, 0.0  ;;  %v86_v5 = vcombine.high %v557_v2, %v557_v2  ;;  %v95_v7 = vsel %vm89_vm0, %v557_v2, 0.0  ;;  %v368_v17 = vld [vmem:[#allocation9 + $0x1f8] sm:$0xff]  ;;  %v367_v34 = vld [vmem:[#allocation9 + $0x1f0] sm:$0xff]  ;;  %v366_v38 = vld [vmem:[#allocation9 + $0x1e8] sm:$0xff] }
  0x36   :  { %547 = vmatprep.subr.msk.mxu0 %vm89_vm0, %v149_v14  ;;  %550 = vmatprep.subr.msk.mxu1 %vm89_vm0, %v150_v15  ;;  %v106_v22 = vsub.s32 %v103_v19, %v813_v20  ;;  %v320_v31 = vld [vmem:[#allocation9 + $0x78] sm:$0xff]  ;;  %v319_v35 = vld [vmem:[#allocation9 + $0x70] sm:$0xff]  ;;  %v318_v39 = vld [vmem:[#allocation9 + $0x68] sm:$0xff]  ;;  %vm516_vm4 = vcmask 1041408  }
  0x37   :  { %v91_v6 = vsel %vm89_vm0, %v85_v3, 0.0  ;;  %v96_v8 = vsel %vm89_vm0, %v86_v5, 0.0  ;;  %548 = vmatpush1.msk.msra.mxu0 %vm89_vm0, %v123_v12  ;;  %551 = vmatpush1.msk.msra.mxu1 %vm89_vm0, %v124_v13  ;;  %v352_v32 = vld [vmem:[#allocation9 + $0x178] sm:$0xff]  ;;  %v351_v36 = vld [vmem:[#allocation9 + $0x170] sm:$0xff]  ;;  %v350_v40 = vld [vmem:[#allocation9 + $0x168] sm:$0xff] }
  0x38   :  { %v92_v9 = vadd.f32 %v91_v6, %v90_v4  ;;  %v97_v10 = vadd.f32 %v96_v8, %v95_v7  ;;  %558 = vmatprep.subr.mxu0 %v336_v16  ;;  %593 = vmatprep.subr.mxu1 %v368_v17  ;;  %v333_v41 = vld [vmem:[#allocation9 + $0xe0] sm:$0xff]  ;;  %v332_v45 = vld [vmem:[#allocation9 + $0xd8] sm:$0xff]  ;;  %v331_v49 = vld [vmem:[#allocation9 + $0xd0] sm:$0xff] }
  0x39   :  { %v365_v42 = vld [vmem:[#allocation9 + $0x1e0] sm:$0xff]  ;;  %v364_v46 = vld [vmem:[#allocation9 + $0x1d8] sm:$0xff]  ;;  %v363_v50 = vld [vmem:[#allocation9 + $0x1d0] sm:$0xff] }
  0x3a   :  { %93 = vadd.xlane.f32.xlu0 %v92_v9  ;;  %v78_v26 = vld [vmem:[#allocation2] sm:$0x3]  ;;  %v316_v47 = vld [vmem:[#allocation9 + $0x58] sm:$0xff]  ;;  %v315_v51 = vld [vmem:[#allocation9 + $0x50] sm:$0xff] }
  0x3b   :  { %v317_v43 = vld [vmem:[#allocation9 + $0x60] sm:$0xff]  ;;  %v348_v48 = vld [vmem:[#allocation9 + $0x158] sm:$0xff]  ;;  %v347_v52 = vld [vmem:[#allocation9 + $0x150] sm:$0xff] }
  0x3c   :  { %v349_v44 = vld [vmem:[#allocation9 + $0x160] sm:$0xff]  ;;  %v330_v53 = vld [vmem:[#allocation9 + $0xc8] sm:$0xff]  ;;  %v328_v61 = vld [vmem:[#allocation9 + $0xb8] sm:$0xff] }
  0x3d   :  { %v362_v54 = vld [vmem:[#allocation9 + $0x1c8] sm:$0xff]  ;;  %v329_v57 = vld [vmem:[#allocation9 + $0xc0] sm:$0xff]  ;;  %v360_v62 = vld [vmem:[#allocation9 + $0x1b8] sm:$0xff] }
  0x3e   :  { %98 = vadd.xlane.f32.xlu0 %v97_v10  ;;  %v314_v55 = vld [vmem:[#allocation9 + $0x48] sm:$0xff]  ;;  %v361_v58 = vld [vmem:[#allocation9 + $0x1c0] sm:$0xff]  ;;  %v312_v63 = vld [vmem:[#allocation9 + $0x38] sm:$0xff] }
  0x3f   :  { %v346_v56 = vld [vmem:[#allocation9 + $0x148] sm:$0xff]  ;;  %v313_v59 = vld [vmem:[#allocation9 + $0x40] sm:$0xff]  ;;  %v344_v0 = vld [vmem:[#allocation9 + $0x138] sm:$0xff] }
  0x40   :  { %v345_v60 = vld [vmem:[#allocation9 + $0x140] sm:$0xff]  ;;  %v327_v1 = vld [vmem:[#allocation9 + $0xb0] sm:$0xff]  ;;  %v326_v5 = vld [vmem:[#allocation9 + $0xa8] sm:$0xff] }
  0x41   :  { %v359_v2 = vld [vmem:[#allocation9 + $0x1b0] sm:$0xff]  ;;  %v358_v6 = vld [vmem:[#allocation9 + $0x1a8] sm:$0xff]  ;;  %v325_v9 = vld [vmem:[#allocation9 + $0xa0] sm:$0xff] }
  0x42   :  { %v311_v3 = vld [vmem:[#allocation9 + $0x30] sm:$0xff]  ;;  %v310_v7 = vld [vmem:[#allocation9 + $0x28] sm:$0xff]  ;;  %v357_v10 = vld [vmem:[#allocation9 + $0x1a0] sm:$0xff] }
  0x43   :  { %v343_v4 = vld [vmem:[#allocation9 + $0x130] sm:$0xff]  ;;  %v342_v8 = vld [vmem:[#allocation9 + $0x128] sm:$0xff]  ;;  %v309_v11 = vld [vmem:[#allocation9 + $0x20] sm:$0xff] }
  0x44   :  { %v341_v12 = vld [vmem:[#allocation9 + $0x120] sm:$0xff]  ;;  %v324_v13 = vld [vmem:[#allocation9 + $0x98] sm:$0xff]  ;;  %v323_v17 = vld [vmem:[#allocation9 + $0x90] sm:$0xff] }
  0x45   :  { %v356_v14 = vld [vmem:[#allocation9 + $0x198] sm:$0xff]  ;;  %v355_v18 = vld [vmem:[#allocation9 + $0x190] sm:$0xff] }
  0x46   :  { %v308_v15 = vld [vmem:[#allocation9 + $0x18] sm:$0xff]  ;;  %v307_v19 = vld [vmem:[#allocation9 + $0x10] sm:$0xff] }
  0x47   :  { %v340_v16 = vld [vmem:[#allocation9 + $0x118] sm:$0xff] }
  0xc3   :  { %v94_v21 = vpop.xlane.xlu0 %93 }
  0xc4   :  { %v107_v24 = vrot.slane %v94_v21, %v106_v22  ;;  %v339_v21 = vld [vmem:[#allocation9 + $0x110] sm:$0xff] }
  0xc7   :  { %v99_v23 = vpop.xlane.xlu0 %98 }
  0xc8   :  { %v111_v25 = vrot.slane %v99_v23, %v106_v22  ;;  %v322_v22 = vld [vmem:[#allocation9 + $0x88] sm:$0xff] }
  0xc9   :  { %v354_v23 = vld [vmem:[#allocation9 + $0x188] sm:$0xff] }
  0xca   :  { %v113_v27 = vsel %vm112_vm2, %v111_v25, %v107_v24  ;;  %v306_v24 = vld [vmem:[#allocation9 + $0x8] sm:$0xff] }
  0xcb   :  { %v115_v28 = vadd.f32 %v113_v27, %v78_v26  ;;  %v338_v25 = vld [vmem:[#allocation9 + $0x108] sm:$0xff]  ;;  %v321_v26 = vld [vmem:[#allocation9 + $0x80] sm:$0xff] }
  0xcc   :  { %v353_v27 = vld [vmem:[#allocation9 + $0x180] sm:$0xff] }
  0xcd   :  { %117 = vst.msk [vmem:[#allocation2] sm:$0x3] %vm76_vm1, %v115_v28  ;;  %v305_v28 = vld [vmem:[#allocation9] sm:$0xff] }
  0xd4   :  { %v121_v29 = vld [vmem:[#allocation2] sm:$0x3] }
  0xd5   :  { %v122_v30 = vmul.f32 0.00390625, %v121_v29  ;;  %v337_v29 = vld [vmem:[#allocation9 + $0x100] sm:$0xff] }
  0xd7   :  { %549 = vmatmul.mubr.msk.f32.vlgmr.msra.gmra.mxu0 %vm151_vm3, %v122_v30  ;;  %552 = vmatmul.mubr.msk.f32.vlgmr.msra.gmra.mxu1 %vm151_vm3, %v122_v30  ;;  %v133_v30 = vsub.s32 1, %v813_v20 }
  0xd8   :  { %559 = vmatpush3.msra.mxu0 %v320_v31  ;;  %594 = vmatpush3.msra.mxu1 %v352_v32  ;;  %v141_v31 = vsub.s32 3, %v813_v20  ;;  %v129_v32 = vsub.s32 0, %v813_v20 }
  0xd9   :  { %560 = vmatprep.subr.mxu0 %v335_v33  ;;  %595 = vmatprep.subr.mxu1 %v367_v34  ;;  %v137_v33 = vsub.s32 2, %v813_v20  ;;  %v125_v34 = vld [vmem:[#allocation8] sm:$0xf]  ;;  %v553_v20 = vld [vmem:[%s831_s4] ss:$0 sm:$0xff]  ;;  %s761_s4 = smov [#allocation11]  }
  0xda   :  { %561 = vmatpush3.msra.mxu0 %v319_v35  ;;  %596 = vmatpush3.msra.mxu1 %v351_v36  ;;  %v134_v35 = vrot.slane %v125_v34, %v133_v30  ;;  %v142_v36 = vrot.slane %v125_v34, %v141_v31  ;;  %s536_s15 = sshll.u32 %s761_s4, 4  ;;  %s537_s15 = int_to_ptr.vmem [resolvable:$true] %s536_s15 }
  0xdb   :  { %562 = vmatprep.subr.mxu0 %v334_v37  ;;  %597 = vmatprep.subr.mxu1 %v366_v38  ;;  %v130_v37 = vrot.slane %v125_v34, %v129_v32  ;;  %s724_s16 = scalar_lea.vmem %s537_s15, 32  ;;  %p729_p7 = scmp.lt.s32.totalorder %s537_s15, %s537_s15 }
  0xdc   :  { %563 = vmatpush3.msra.mxu0 %v318_v39  ;;  %598 = vmatpush3.msra.mxu1 %v350_v40  ;;  %v138_v39 = vrot.slane %v125_v34, %v137_v33  ;;  %p725_p6 = scmp.ne.s32.totalorder %s537_s15, %s724_s16  ;;  %p730_p8 = scmp.lt.s32.totalorder %s724_s16, %s724_s16 }
  0xdd   :  { %564 = vmatprep.subr.mxu0 %v333_v41  ;;  %599 = vmatprep.subr.mxu1 %v365_v42 }
  0xde   :  { %565 = vmatpush3.msra.mxu0 %v317_v43  ;;  %600 = vmatpush3.msra.mxu1 %v349_v44  ;;  %p731_p9 = por %p730_p8, %p729_p7 }
  0xdf   :  { %566 = vmatprep.subr.mxu0 %v332_v45  ;;  %601 = vmatprep.subr.mxu1 %v364_v46 }
  0xe0   :  { %567 = vmatpush3.msra.mxu0 %v316_v47  ;;  %602 = vmatpush3.msra.mxu1 %v348_v48  ;;  %p732_p10 = pnand %p731_p9, %p725_p6 }
  0xe1   :  { %568 = vmatprep.subr.mxu0 %v331_v49  ;;  %603 = vmatprep.subr.mxu1 %v363_v50 }
  0xe2   :  { %569 = vmatpush3.msra.mxu0 %v315_v51  ;;  %604 = vmatpush3.msra.mxu1 %v347_v52 }
  0xe3   :  { %570 = vmatprep.subr.mxu0 %v330_v53  ;;  %605 = vmatprep.subr.mxu1 %v362_v54 }
  0xe4   :  { %571 = vmatpush3.msra.mxu0 %v314_v55  ;;  %606 = vmatpush3.msra.mxu1 %v346_v56 }
  0xe5   :  { %572 = vmatprep.subr.mxu0 %v329_v57  ;;  %607 = vmatprep.subr.mxu1 %v361_v58 }
  0xe6   :  { %573 = vmatpush3.msra.mxu0 %v313_v59  ;;  %608 = vmatpush3.msra.mxu1 %v345_v60 }
  0xe7   :  { %574 = vmatprep.subr.mxu0 %v328_v61  ;;  %609 = vmatprep.subr.mxu1 %v360_v62 }
  0xe8   :  { %575 = vmatpush3.msra.mxu0 %v312_v63  ;;  %610 = vmatpush3.msra.mxu1 %v344_v0 }
  0xe9   :  { %576 = vmatprep.subr.mxu0 %v327_v1  ;;  %611 = vmatprep.subr.mxu1 %v359_v2 }
  0xea   :  { %577 = vmatpush3.msra.mxu0 %v311_v3  ;;  %612 = vmatpush3.msra.mxu1 %v343_v4 }
  0xeb   :  { %578 = vmatprep.subr.mxu0 %v326_v5  ;;  %613 = vmatprep.subr.mxu1 %v358_v6 }
  0xec   :  { %579 = vmatpush3.msra.mxu0 %v310_v7  ;;  %614 = vmatpush3.msra.mxu1 %v342_v8 }
  0xed   :  { %580 = vmatprep.subr.mxu0 %v325_v9  ;;  %615 = vmatprep.subr.mxu1 %v357_v10 }
  0xee   :  { %581 = vmatpush3.msra.mxu0 %v309_v11  ;;  %616 = vmatpush3.msra.mxu1 %v341_v12 }
  0xef   :  { %582 = vmatprep.subr.mxu0 %v324_v13  ;;  %617 = vmatprep.subr.mxu1 %v356_v14 }
  0xf0   :  { %583 = vmatpush3.msra.mxu0 %v308_v15  ;;  %618 = vmatpush3.msra.mxu1 %v340_v16 }
  0xf1   :  { %584 = vmatprep.subr.mxu0 %v323_v17  ;;  %619 = vmatprep.subr.mxu1 %v355_v18 }
  0xf2   :  { %585 = vmatpush3.msra.mxu0 %v307_v19  ;;  %620 = vmatpush3.msra.mxu1 %v339_v21 }
  0xf3   :  { %586 = vmatprep.subr.mxu0 %v322_v22  ;;  %621 = vmatprep.subr.mxu1 %v354_v23 }
  0xf4   :  { %587 = vmatpush3.msra.mxu0 %v306_v24  ;;  %622 = vmatpush3.msra.mxu1 %v338_v25 }
  0xf5   :  { %588 = vmatprep.subr.mxu0 %v321_v26  ;;  %623 = vmatprep.subr.mxu1 %v353_v27 }
  0xf6   :  { %589 = vmatpush3.msra.mxu0 %v305_v28  ;;  %624 = vmatpush3.msra.mxu1 %v337_v29 }
 0x197   :  { %v229_v38 = vpop.f32.mrf.mxu0  ;;  %v300_v40 = vpop.f32.mrf.mxu1 }
 0x198   :  { %v230_v45 = vadd.f32 %v229_v38, %v130_v37  ;;  %v301_v46 = vadd.f32 %v300_v40, %v138_v39 }
 0x199   :  { %v231_v41 = vpop.f32.mrf.mxu0  ;;  %v302_v42 = vpop.f32.mrf.mxu1 }
 0x19a   :  { %v232_v43 = vadd.f32 %v231_v41, %v134_v35  ;;  %v303_v44 = vadd.f32 %v302_v42, %v142_v36 }
 0x19c   :  { %440 = vmatprep.mubr.f32.mxu0 %v232_v43  ;;  %510 = vmatprep.mubr.f32.mxu1 %v303_v44 }
 0x19d   :  { %441 = vmatmul.mubr.f32.vlgmr.msra.gmra.mxu0 %v230_v45  ;;  %511 = vmatmul.mubr.f32.vlgmr.msra.gmra.mxu1 %v301_v46 }
 0x25d   :  { %v590_v47 = vpop.f32.mrf.mxu0  ;;  %v625_v48 = vpop.f32.mrf.mxu1 }
 0x25f   :  { %v591_v49 = vpop.f32.mrf.mxu0  ;;  %v626_v50 = vpop.f32.mrf.mxu1 }
 0x260   :  { %v592_v51 = vadd.f32 %v591_v49, %v590_v47  ;;  %v627_v53 = vadd.f32 %v626_v50, %v625_v48 }
 0x262   :  { %v443_v52 = vadd.f32 %v592_v51, %v553_v20 }
 0x264   :  { %v513_v54 = vadd.f32 %v627_v53, %v443_v52 }
 0x266   :  { %v517_v55 = vsel %vm516_vm4, %v513_v54, -inf }
 0x267   :  { %518 = vmax.xlane.f32.xlu1 %v517_v55 }
 0x2f0   :  { %v519_v56 = vpop.xlane.xlu1 %518 }
 0x2f1   :  { %v520_v57 = vsub.f32 %v513_v54, %v519_v56 }
 0x2f3   :  { %v521_v58 = vmul.f32 1.442695, %v520_v57 }
 0x2f5   :  { %640 = vpow2.f32 %v521_v58 }
 0x302   :  { %v641_v59 = vpop.eup %640 }
 0x303   :  { %v523_v60 = vsel %vm516_vm4, %v641_v59, 0.0 }
 0x304   :  { %524 = vadd.xlane.f32.xlu1 %v523_v60 }
 0x38d   :  { %v525_v61 = vpop.xlane.xlu1 %524 }
 0x38e   :  { %642 = vlog2.f32 %v525_v61 }
 0x39b   :  { %v643_v62 = vpop.eup %642 }
 0x39c   :  { %v527_v63 = vmul.f32 0.6931472, %v643_v62 }
 0x39e   :  { %v528_v0 = vsub.f32 %v520_v57, %v527_v63 }
 0x3a0   :  { %529 = vst [vmem:[#allocation11] sm:$0x3] %v528_v0 }
 0x3a1   :  { %735 = shalt.err (!%p732_p10)
}
 0x3a2   :  { %539 = dma.vmem_to_hbm [thread:$0]  %s537_s15, 32, %s832_s5, [#allocation5]  }
 0x3a3   :  { %750 = dma.done.wait [#allocation5], 32  }
 0x3a4   :  { %751 = vsyncadd [#allocation5], 4294967264 }
 0x3a5   :  { %543 = vsyncpa [#allocation4], 1 }
 0x3a6   :  { %544 = vsyncpa [#allocation7], 1 }
 0x3a7   :  { %545 = vsyncpa [#allocation10], 1 }
 0x3a8   :  { %546 = vsyncpa [#allocation5], 1 }

</bundles_post_ra>
